<compile_context>
chip_gen: v6e
topology: v6e:2x2x1
jax: 0.10.0
libtpu: 0.0.40
codegen_flags: <defaults>
</compile_context>

<pallas_src>
import jax
import jax.numpy as jnp
from jax.experimental import pallas as pl
from jax.experimental.pallas import tpu as pltpu

LANES = 128            # TPU vreg lane width
SUBLANES = 8           # f32 sublane count
NUM_LAYERS = 4
IN_DIMS = (10, 8, 6, 4)
OUT_DIMS = (8, 6, 4, 1)
K_PAD = 16             # max(IN_DIMS)=10 rounded up to the f32 sublane multiple


def mlp_kernel(x_ref, w_ref, b_ref, o_ref):
    """Fused MLP on narrow (16-lane) activations with a lane-dense output.

    x_ref: (Bp, 16)       padded input  (columns >= 10 are zero)
    w_ref: (4, 16, 128)   per-layer zero-padded weights, (in, out) layout
    b_ref: (4, 128)       per-layer zero-padded biases
    o_ref: (Bp, 128)      lane-dense output; column 0 holds the model output
    """
    def sigmoid(v):
        # tanh form: single EUP transcendental + 2 VPU ops; matches the exact
        # logistic to well within the 1e-5 correctness tolerance.
        return 0.5 * (jnp.tanh(0.5 * v) + 1.0)

    h = x_ref[...]                                   # (Bp, 16) f32
    b_all = b_ref[...]                               # (4, 128) f32

    # Hidden layers: one small MXU pass (K=16, N=128) + sigmoid each.  Only the
    # first 16 output lanes are carried forward; zero weight rows fan_in..15 in
    # the next layer kill the sigmoid(0)=0.5 values in the padded lanes.
    for i in range(NUM_LAYERS - 1):
        z = jnp.dot(h, w_ref[i], preferred_element_type=jnp.float32)
        h = sigmoid(z[:, :K_PAD] + b_all[i:i + 1, :K_PAD])       # (Bp, 16)

    # Final linear layer (no activation); only column 0 of the padded weight /
    # bias is nonzero, so y[:, 0] is the result and y[:, 1:] is exactly 0.
    y = jnp.dot(h, w_ref[NUM_LAYERS - 1],
                preferred_element_type=jnp.float32) + b_all[NUM_LAYERS - 1:, :]
    o_ref[...] = y.astype(o_ref.dtype)


def pack_params(params):
    """Pack the 8 tiny nn.Linear tensors into two zero-padded slabs."""
    w_slab = jnp.zeros((NUM_LAYERS, K_PAD, LANES), jnp.float32)
    b_slab = jnp.zeros((NUM_LAYERS, LANES), jnp.float32)
    for i, (fi, fo) in enumerate(zip(IN_DIMS, OUT_DIMS)):
        w_slab = w_slab.at[i, :fi, :fo].set(params[f"w{i + 1}"])
        b_slab = b_slab.at[i, :fo].set(params[f"b{i + 1}"][0])
    return w_slab, b_slab


def mlp_forward(x, w_slab, b_slab):
    """x: (B, 10) f32.  Returns (B, 1) f32 matching the PyTorch Model.forward."""
    B = x.shape[0]
    Bp = max(SUBLANES, ((B + SUBLANES - 1) // SUBLANES) * SUBLANES)
    x_pad = jnp.zeros((Bp, K_PAD), jnp.float32).at[:B, :IN_DIMS[0]].set(x)

    out = pl.pallas_call(
        mlp_kernel,
        out_shape=jax.ShapeDtypeStruct((Bp, LANES), jnp.float32),
        # Single block, no grid: every operand mapped in full to VMEM.
        in_specs=[pl.BlockSpec(memory_space=pltpu.VMEM)] * 3,
        out_specs=pl.BlockSpec(memory_space=pltpu.VMEM),
    )(x_pad, w_slab, b_slab)
    # Lane-dense slab -> user-facing (B, 1).
    return out[:B, :OUT_DIMS[-1]]


def init_params(key):
    """Deterministic init mimicking torch.nn.Linear (uniform +/- 1/sqrt(fan_in))."""
    params = {}
    for i, (fan_in, fan_out) in enumerate(zip(IN_DIMS, OUT_DIMS), start=1):
        key, kw, kb = jax.random.split(key, 3)
        bound = 1.0 / jnp.sqrt(float(fan_in))
        params[f"w{i}"] = jax.random.uniform(
            kw, (fan_in, fan_out), jnp.float32, -bound, bound)
        params[f"b{i}"] = jax.random.uniform(
            kb, (1, fan_out), jnp.float32, -bound, bound)
    return params


def reference_forward(x, params):
    """Plain-JAX reference for the correctness check."""
    h = jax.nn.sigmoid(x @ params["w1"] + params["b1"])
    h = jax.nn.sigmoid(h @ params["w2"] + params["b2"])
    h = jax.nn.sigmoid(h @ params["w3"] + params["b3"])
    return h @ params["w4"] + params["b4"]


if __name__ == "__main__":
    key = jax.random.PRNGKey(0)
    params = init_params(key)
    w_slab, b_slab = pack_params(params)

    # Batch of 4 inputs with 10 features; first row is the vector from the
    # original PyTorch script.
    x0 = jnp.array([-0.04547248, -0.04464164, -0.0730303, -0.08141377,
                    0.08374012, 0.02780893, 0.17381579, -0.03949338,
                    -0.00421986, 0.00306441], dtype=jnp.float32)
    key, kx = jax.random.split(key)
    x_rest = jax.random.normal(kx, (3, 10), jnp.float32) * 0.1
    x = jnp.concatenate([x0[None, :], x_rest], axis=0)          # (4, 10)

    out = mlp_forward(x, w_slab, b_slab)
    out = jax.block_until_ready(out)

    ref = reference_forward(x, params)
    assert out.shape == (4, 1), out.shape
    assert jnp.allclose(out, ref, atol=1e-5, rtol=1e-5), (out, ref)

    print("KERNEL_OK")
</pallas_src>

<mosaic_0001>
module attributes {stable_mosaic.version = 11 : i64} {
  func.func @mlp_kernel(%arg0: memref<8x16xf32, #tpu.memory_space<vmem>>, %arg1: memref<4x16x128xf32, #tpu.memory_space<vmem>>, %arg2: memref<4x128xf32, #tpu.memory_space<vmem>>, %arg3: memref<8x128xf32, #tpu.memory_space<vmem>>) attributes {dimension_semantics = [], scalar_prefetch = 0 : i64, scratch_operands = 0 : i64, tpu.core_type = #tpu.core_type<tc>} {
    %c0 = arith.constant 0 : index
    %c0_0 = arith.constant 0 : index
    %0 = vector.load %arg0[%c0, %c0_0] : memref<8x16xf32, #tpu.memory_space<vmem>>, vector<8x16xf32>
    %c0_1 = arith.constant 0 : index
    %c0_2 = arith.constant 0 : index
    %1 = vector.load %arg2[%c0_1, %c0_2] : memref<4x128xf32, #tpu.memory_space<vmem>>, vector<4x128xf32>
    %c0_3 = arith.constant 0 : index
    %c0_4 = arith.constant 0 : index
    %c0_5 = arith.constant 0 : index
    %2 = vector.load %arg1[%c0_3, %c0_4, %c0_5] : memref<4x16x128xf32, #tpu.memory_space<vmem>>, vector<1x16x128xf32>
    %3 = vector.shape_cast %2 : vector<1x16x128xf32> to vector<16x128xf32>
    %cst = arith.constant dense<0.000000e+00> : vector<8x128xf32>
    %4 = tpu.matmul %0, %3, %cst {dimension_numbers = #tpu.dot_dimension_numbers<[1], [0], [0], [1], [0, 0, 1, 1], [], []>} : vector<8x16xf32>, vector<16x128xf32>, vector<8x128xf32> -> vector<8x128xf32>
    %5 = vector.extract_strided_slice %4 {offsets = [0, 0], sizes = [8, 16], strides = [1, 1]} : vector<8x128xf32> to vector<8x16xf32>
    %6 = vector.extract_strided_slice %1 {offsets = [0, 0], sizes = [1, 16], strides = [1, 1]} : vector<4x128xf32> to vector<1x16xf32>
    %7 = vector.broadcast %6 : vector<1x16xf32> to vector<8x16xf32>
    %8 = arith.addf %5, %7 : vector<8x16xf32>
    %cst_6 = arith.constant 5.000000e-01 : f32
    %9 = vector.broadcast %cst_6 : f32 to vector<8x16xf32>
    %10 = arith.mulf %9, %8 : vector<8x16xf32>
    %11 = math.tanh %10 : vector<8x16xf32>
    %cst_7 = arith.constant 1.000000e+00 : f32
    %12 = vector.broadcast %cst_7 : f32 to vector<8x16xf32>
    %13 = arith.addf %11, %12 : vector<8x16xf32>
    %cst_8 = arith.constant 5.000000e-01 : f32
    %14 = vector.broadcast %cst_8 : f32 to vector<8x16xf32>
    %15 = arith.mulf %14, %13 : vector<8x16xf32>
    %c1 = arith.constant 1 : index
    %c0_9 = arith.constant 0 : index
    %c0_10 = arith.constant 0 : index
    %16 = vector.load %arg1[%c1, %c0_9, %c0_10] : memref<4x16x128xf32, #tpu.memory_space<vmem>>, vector<1x16x128xf32>
    %17 = vector.shape_cast %16 : vector<1x16x128xf32> to vector<16x128xf32>
    %cst_11 = arith.constant dense<0.000000e+00> : vector<8x128xf32>
    %18 = tpu.matmul %15, %17, %cst_11 {dimension_numbers = #tpu.dot_dimension_numbers<[1], [0], [0], [1], [0, 0, 1, 1], [], []>} : vector<8x16xf32>, vector<16x128xf32>, vector<8x128xf32> -> vector<8x128xf32>
    %19 = vector.extract_strided_slice %18 {offsets = [0, 0], sizes = [8, 16], strides = [1, 1]} : vector<8x128xf32> to vector<8x16xf32>
    %20 = vector.extract_strided_slice %1 {offsets = [1, 0], sizes = [1, 16], strides = [1, 1]} : vector<4x128xf32> to vector<1x16xf32>
    %21 = vector.broadcast %20 : vector<1x16xf32> to vector<8x16xf32>
    %22 = arith.addf %19, %21 : vector<8x16xf32>
    %cst_12 = arith.constant 5.000000e-01 : f32
    %23 = vector.broadcast %cst_12 : f32 to vector<8x16xf32>
    %24 = arith.mulf %23, %22 : vector<8x16xf32>
    %25 = math.tanh %24 : vector<8x16xf32>
    %cst_13 = arith.constant 1.000000e+00 : f32
    %26 = vector.broadcast %cst_13 : f32 to vector<8x16xf32>
    %27 = arith.addf %25, %26 : vector<8x16xf32>
    %cst_14 = arith.constant 5.000000e-01 : f32
    %28 = vector.broadcast %cst_14 : f32 to vector<8x16xf32>
    %29 = arith.mulf %28, %27 : vector<8x16xf32>
    %c2 = arith.constant 2 : index
    %c0_15 = arith.constant 0 : index
    %c0_16 = arith.constant 0 : index
    %30 = vector.load %arg1[%c2, %c0_15, %c0_16] : memref<4x16x128xf32, #tpu.memory_space<vmem>>, vector<1x16x128xf32>
    %31 = vector.shape_cast %30 : vector<1x16x128xf32> to vector<16x128xf32>
    %cst_17 = arith.constant dense<0.000000e+00> : vector<8x128xf32>
    %32 = tpu.matmul %29, %31, %cst_17 {dimension_numbers = #tpu.dot_dimension_numbers<[1], [0], [0], [1], [0, 0, 1, 1], [], []>} : vector<8x16xf32>, vector<16x128xf32>, vector<8x128xf32> -> vector<8x128xf32>
    %33 = vector.extract_strided_slice %32 {offsets = [0, 0], sizes = [8, 16], strides = [1, 1]} : vector<8x128xf32> to vector<8x16xf32>
    %34 = vector.extract_strided_slice %1 {offsets = [2, 0], sizes = [1, 16], strides = [1, 1]} : vector<4x128xf32> to vector<1x16xf32>
    %35 = vector.broadcast %34 : vector<1x16xf32> to vector<8x16xf32>
    %36 = arith.addf %33, %35 : vector<8x16xf32>
    %cst_18 = arith.constant 5.000000e-01 : f32
    %37 = vector.broadcast %cst_18 : f32 to vector<8x16xf32>
    %38 = arith.mulf %37, %36 : vector<8x16xf32>
    %39 = math.tanh %38 : vector<8x16xf32>
    %cst_19 = arith.constant 1.000000e+00 : f32
    %40 = vector.broadcast %cst_19 : f32 to vector<8x16xf32>
    %41 = arith.addf %39, %40 : vector<8x16xf32>
    %cst_20 = arith.constant 5.000000e-01 : f32
    %42 = vector.broadcast %cst_20 : f32 to vector<8x16xf32>
    %43 = arith.mulf %42, %41 : vector<8x16xf32>
    %c3 = arith.constant 3 : index
    %c0_21 = arith.constant 0 : index
    %c0_22 = arith.constant 0 : index
    %44 = vector.load %arg1[%c3, %c0_21, %c0_22] : memref<4x16x128xf32, #tpu.memory_space<vmem>>, vector<1x16x128xf32>
    %45 = vector.shape_cast %44 : vector<1x16x128xf32> to vector<16x128xf32>
    %cst_23 = arith.constant dense<0.000000e+00> : vector<8x128xf32>
    %46 = tpu.matmul %43, %45, %cst_23 {dimension_numbers = #tpu.dot_dimension_numbers<[1], [0], [0], [1], [0, 0, 1, 1], [], []>} : vector<8x16xf32>, vector<16x128xf32>, vector<8x128xf32> -> vector<8x128xf32>
    %47 = vector.extract_strided_slice %1 {offsets = [3, 0], sizes = [1, 128], strides = [1, 1]} : vector<4x128xf32> to vector<1x128xf32>
    %48 = vector.broadcast %47 : vector<1x128xf32> to vector<8x128xf32>
    %49 = arith.addf %46, %48 : vector<8x128xf32>
    %c0_24 = arith.constant 0 : index
    %c0_25 = arith.constant 0 : index
    %50 = vector.load %arg3[%c0_24, %c0_25] : memref<8x128xf32, #tpu.memory_space<vmem>>, vector<8x128xf32>
    tpu.vector_store %arg3[%c0_24, %c0_25], %49 {strides = array<i32>} : memref<8x128xf32, #tpu.memory_space<vmem>>, vector<8x128xf32>,
    return
  }
}

</mosaic_0001>

<bundles_post_ra>
// kernel: tpu_custom_call.1
= control target key start
LH: loop header
LB: loop body
LE: loop exit
PB: predicated region body
PF: predicated region fallthrough
CT: control target
= control target key end

     0   :  { %8 = vsyncpa [#allocation3], 0  ;;  %s598_s0 = inlined_call_operand.hbm [shape: f32[8,16], index: 0, kind: input, shape index: {}]   ;;  %s599_s1 = inlined_call_operand.hbm [shape: f32[4,16,128], index: 1, kind: input, shape index: {}]   ;;  %s600_s2 = inlined_call_operand.hbm [shape: f32[4,128], index: 2, kind: input, shape index: {}]   ;;  %s601_s3 = inlined_call_operand.hbm [shape: f32[8,128], index: 3, kind: output, shape index: {}]  }
   0x1   :  { %9 = vsyncpa [#allocation6], 0 }
   0x2   :  { %10 = vsyncpa [#allocation4], 0  ;;  %s550_s12 = smov [#allocation5]  }
   0x3   :  { %s26_s13 = sshll.u32 %s550_s12, 4  ;;  %s27_s13 = int_to_ptr.vmem [resolvable:$true] %s26_s13 }
   0x4   :  { %s472_s14 = scalar_lea.vmem %s27_s13, 1024  ;;  %p477_p1 = scmp.lt.s32.totalorder %s27_s13, %s27_s13 }
   0x5   :  { %p473_p0 = scmp.ne.s32.totalorder %s27_s13, %s472_s14  ;;  %p478_p2 = scmp.lt.s32.totalorder %s472_s14, %s472_s14 }
   0x7   :  { %p479_p3 = por %p478_p2, %p477_p1 }
   0x9   :  { %p480_p4 = pnand %p479_p3, %p473_p0 }
   0xb   :  { %483 = shalt.err (!%p480_p4)
}
   0xc   :  { %s551_s15 = smov 128   ;;  %s552_s16 = smov 8  }
   0xd   :  { %32 = dma.hbm_to_vmem [thread:$0]  %s599_s1, 1024, %s27_s13, [#allocation6], %s551_s15, %s551_s15, %s552_s16  }
   0xe   :  { %s553_s19 = smov [#allocation2]   ;;  %s554_s21 = smov [#allocation7]  }
   0xf   :  { %s17_s20 = sshll.u32 %s553_s19, 4  ;;  %s39_s22 = sshll.u32 %s554_s21, 4  ;;  %s18_s20 = int_to_ptr.vmem [resolvable:$true] %s17_s20  ;;  %s40_s22 = int_to_ptr.vmem [resolvable:$true] %s39_s22 }
  0x10   :  { %s492_s23 = scalar_lea.vmem %s18_s20, 128  ;;  %p497_p6 = scmp.lt.s32.totalorder %s18_s20, %s18_s20 }
  0x11   :  { %p493_p5 = scmp.ne.s32.totalorder %s18_s20, %s492_s23  ;;  %p498_p7 = scmp.lt.s32.totalorder %s492_s23, %s492_s23 }
  0x13   :  { %p499_p8 = por %p498_p7, %p497_p6 }
  0x15   :  { %p500_p9 = pnand %p499_p8, %p493_p5 }
  0x17   :  { %503 = shalt.err (!%p500_p9)
}
  0x18   :  { %20 = dma.hbm_to_vmem [thread:$0]  %s598_s0, 128, %s18_s20, [#allocation3]  }
  0x19   :  { %s512_s26 = scalar_lea.vmem %s40_s22, 64  ;;  %p517_p11 = scmp.lt.s32.totalorder %s40_s22, %s40_s22 }
  0x1a   :  { %p513_p10 = scmp.ne.s32.totalorder %s40_s22, %s512_s26  ;;  %p518_p12 = scmp.lt.s32.totalorder %s512_s26, %s512_s26 }
  0x1c   :  { %p519_p13 = por %p518_p12, %p517_p11 }
  0x1e   :  { %p520_p0 = pnand %p519_p13, %p513_p10 }
  0x20   :  { %523 = shalt.err (!%p520_p0)
}
  0x21   :  { %42 = dma.hbm_to_vmem [thread:$0]  %s600_s2, 64, %s40_s22, [#allocation6]  }
  0x22   :  { %544 = dma.done.wait [#allocation3], 128  }
  0x23   :  { %545 = vsyncadd [#allocation3], 4294967168 }
  0x24   :  { %546 = dma.done.wait [#allocation6], 1088  }
  0x25   :  { %547 = vsyncadd [#allocation6], 4294966208  ;;  %v555_v0 = vmov 0.0   ;;  %vm556_vm0 = vmmov 0   ;;  %v55_v1 = vld [vmem:[#allocation5 + $0x8] sm:$0xff]  ;;  %v54_v2 = vld [vmem:[#allocation5] sm:$0xff]  ;;  %v130_v6 = vlaneseq }
  0x26   :  { %422 = vmatprep.subr.mxu0 %v555_v0  ;;  %426 = vmatprep.mubr.msk.f32.mxu0 %vm556_vm0, %v555_v0  ;;  %v52_v3 = vld [vmem:[#allocation2] sm:$0xff]  ;;  %vm56_vm1 = vcmask 130048   ;;  %v140_v5 = vld [vmem:[#allocation5 + $0x10] sm:$0xff]  ;;  %v53_v9 = vld [vmem:[#allocation7] sm:$0xf]  ;;  %s557_s0 = smov [#allocation8]  }
  0x27   :  { %429 = vmatprep.subr.mxu1 %v555_v0  ;;  %433 = vmatprep.mubr.msk.f32.mxu1 %vm556_vm0, %v555_v0  ;;  %v141_v4 = vld [vmem:[#allocation5 + $0x18] sm:$0xff]  ;;  %v131_v7 = vshrl.u32 %v130_v6, 7  ;;  %v226_v18 = vld [vmem:[#allocation5 + $0x28] sm:$0xff]  ;;  %v225_v19 = vld [vmem:[#allocation5 + $0x20] sm:$0xff]  ;;  %s396_s2 = sshll.u32 %s557_s0, 4  ;;  %s397_s2 = int_to_ptr.vmem [resolvable:$true] %s396_s2 }
  0x28   :  { %423 = vmatpush3.msra.mxu0 %v55_v1  ;;  %430 = vmatpush3.msra.mxu1 %v141_v4  ;;  %v311_v29 = vld [vmem:[#allocation5 + $0x38] sm:$0xff]  ;;  %v310_v30 = vld [vmem:[#allocation5 + $0x30] sm:$0xff]  ;;  %s524_s28 = scalar_lea.vmem %s397_s2, 128  ;;  %p529_p2 = scmp.lt.s32.totalorder %s397_s2, %s397_s2 }
  0x29   :  { %424 = vmatprep.subr.mxu0 %v555_v0  ;;  %431 = vmatprep.subr.mxu1 %v555_v0  ;;  %v132_v8 = vsub.s32 0, %v131_v7  ;;  %v217_v20 = vsub.s32 1, %v131_v7  ;;  %v302_v31 = vsub.s32 2, %v131_v7  ;;  %v314_v40 = vsub.s32 3, %v131_v7  ;;  %p525_p1 = scmp.ne.s32.totalorder %s397_s2, %s524_s28  ;;  %p530_p3 = scmp.lt.s32.totalorder %s524_s28, %s524_s28 }
  0x2a   :  { %425 = vmatpush3.msra.mxu0 %v54_v2  ;;  %432 = vmatpush3.msra.mxu1 %v140_v5 }
  0x2b   :  { %427 = vmatmul.mubr.msk.f32.vlgmr.msra.gmra.mxu0 %vm56_vm1, %v52_v3  ;;  %436 = vmatprep.subr.mxu0 %v555_v0  ;;  %v133_v10 = vrot.slane %v53_v9, %v132_v8  ;;  %v218_v21 = vrot.slane %v53_v9, %v217_v20  ;;  %v303_v32 = vrot.slane %v53_v9, %v302_v31  ;;  %p531_p4 = por %p530_p3, %p529_p2 }
  0x2c   :  { %440 = vmatprep.mubr.msk.f32.mxu0 %vm556_vm0, %v555_v0  ;;  %443 = vmatprep.subr.mxu1 %v555_v0  ;;  %v315_v41 = vrot.slane %v53_v9, %v314_v40 }
  0x2d   :  { %437 = vmatpush3.msra.mxu0 %v226_v18  ;;  %p532_p5 = pnand %p531_p4, %p525_p1 }
  0x2e   :  { %438 = vmatprep.subr.mxu0 %v555_v0 }
  0x2f   :  { %439 = vmatpush3.msra.mxu0 %v225_v19 }
  0xeb   :  { %v126_v11 = vpop.f32.mrf.mxu0 }
  0xec   :  { %v134_v12 = vadd.f32 %v133_v10, %v126_v11 }
  0xed   :  { %v428_v13 = vpop.f32.mrf.mxu0 }
  0xee   :  { %v135_v14 = vmul.f32 0.5, %v134_v12 }
  0xf0   :  { %458 = vtanh.f32 %v135_v14 }
  0xfd   :  { %v459_v15 = vpop.eup %458 }
  0xfe   :  { %v137_v16 = vadd.f32 1.0, %v459_v15 }
 0x100   :  { %v138_v17 = vmul.f32 0.5, %v137_v16 }
 0x102   :  { %434 = vmatmul.mubr.msk.f32.vlgmr.msra.gmra.mxu1 %vm56_vm1, %v138_v17 }
 0x103   :  { %447 = vmatprep.mubr.msk.f32.mxu1 %vm556_vm0, %v555_v0  ;;  %444 = vmatpush3.msra.mxu1 %v311_v29 }
 0x104   :  { %445 = vmatprep.subr.mxu1 %v555_v0 }
 0x105   :  { %446 = vmatpush3.msra.mxu1 %v310_v30 }
 0x1c2   :  { %v211_v22 = vpop.f32.mrf.mxu1 }
 0x1c3   :  { %v219_v23 = vadd.f32 %v218_v21, %v211_v22 }
 0x1c4   :  { %v435_v24 = vpop.f32.mrf.mxu1 }
 0x1c5   :  { %v220_v25 = vmul.f32 0.5, %v219_v23 }
 0x1c7   :  { %460 = vtanh.f32 %v220_v25 }
 0x1d4   :  { %v461_v26 = vpop.eup %460 }
 0x1d5   :  { %v222_v27 = vadd.f32 1.0, %v461_v26 }
 0x1d7   :  { %v223_v28 = vmul.f32 0.5, %v222_v27 }
 0x1d9   :  { %441 = vmatmul.mubr.msk.f32.vlgmr.msra.gmra.mxu0 %vm56_vm1, %v223_v28 }
 0x299   :  { %v296_v33 = vpop.f32.mrf.mxu0 }
 0x29a   :  { %v304_v34 = vadd.f32 %v303_v32, %v296_v33 }
 0x29b   :  { %v442_v35 = vpop.f32.mrf.mxu0 }
 0x29c   :  { %v305_v36 = vmul.f32 0.5, %v304_v34 }
 0x29e   :  { %462 = vtanh.f32 %v305_v36 }
 0x2ab   :  { %v463_v37 = vpop.eup %462 }
 0x2ac   :  { %v307_v38 = vadd.f32 1.0, %v463_v37 }
 0x2ae   :  { %v308_v39 = vmul.f32 0.5, %v307_v38 }
 0x2b0   :  { %448 = vmatmul.mubr.msk.f32.vlgmr.msra.gmra.mxu1 %vm56_vm1, %v308_v39 }
 0x370   :  { %v385_v42 = vpop.f32.mrf.mxu1 }
 0x371   :  { %v386_v43 = vadd.f32 %v385_v42, %v315_v41 }
 0x372   :  { %v449_v44 = vpop.f32.mrf.mxu1 }
 0x373   :  { %389 = vst [vmem:[#allocation8] sm:$0xff] %v386_v43 }
 0x374   :  { %535 = shalt.err (!%p532_p5)
}
 0x375   :  { %399 = dma.vmem_to_hbm [thread:$0]  %s397_s2, 128, %s601_s3, [#allocation4]  }
 0x376   :  { %548 = dma.done.wait [#allocation4], 128  }
 0x377   :  { %549 = vsyncadd [#allocation4], 4294967168 }
 0x378   :  { %403 = vsyncpa [#allocation3], 1 }
 0x379   :  { %404 = vsyncpa [#allocation6], 1 }
 0x37a   :  { %405 = vsyncpa [#allocation4], 1 }

</bundles_post_ra>
